<compile_context>
chip_gen: v7x
topology: tpu7x:2x2x1
jax: 0.10.0
libtpu: 0.0.40
codegen_flags: <defaults>
</compile_context>

<pallas_src>
import functools

import jax
import jax.numpy as jnp
from jax.experimental import pallas as pl
from jax.experimental.pallas import tpu as pltpu


# --------------------------------------------------------------------------------------
# Stage 1: fused K/V projection  (computed once per key row, reused by every query block)
# --------------------------------------------------------------------------------------
def _kv_proj_kernel(y_ref, wkv_ref, bkv_ref, k_ref, v_ref, *, feat_size):
    F_ = feat_size
    y = y_ref[...]                                    # (tk, F), input dtype
    kv = jnp.dot(y, wkv_ref[...], preferred_element_type=jnp.float32) + bkv_ref[...]
    # Store in the input dtype so the attention matmuls run at native MXU width.
    k_ref[...] = kv[:, :F_].astype(k_ref.dtype)
    v_ref[...] = kv[:, F_:].astype(v_ref.dtype)


# --------------------------------------------------------------------------------------
# Stage 2: attention with fused Q-projection, online softmax over kv blocks, out-proj.
# --------------------------------------------------------------------------------------
def _attn_kernel(x_ref, k_ref, v_ref, wq_ref, bq_ref, wp_ref, bp_ref, o_ref,
                 q_scr, m_scr, l_scr, acc_scr, *, num_heads, head_dim):
    H, D = num_heads, head_dim
    F_ = H * D
    ki = pl.program_id(2)
    nk = pl.num_programs(2)

    @pl.when(ki == 0)
    def _init():
        # Q projection once per (batch, query block); stored in input dtype.
        x = x_ref[...]                                            # (tq, F)
        q = jnp.dot(x, wq_ref[...], preferred_element_type=jnp.float32) + bq_ref[...]
        q_scr[...] = q.reshape(q.shape[0], H, D).astype(q_scr.dtype)
        m_scr[...] = jnp.full_like(m_scr, -jnp.inf)
        l_scr[...] = jnp.zeros_like(l_scr)
        acc_scr[...] = jnp.zeros_like(acc_scr)

    # Current kv block (input dtype) split into heads.
    k3 = k_ref[...].reshape(-1, H, D)                             # (tk, H, D)
    v3 = v_ref[...].reshape(-1, H, D)                             # (tk, H, D)
    q3 = q_scr[...]                                               # (tq, H, D)

    # Scores for all heads at once; f32 accumulation, inputs stay in input dtype.
    s = jnp.einsum('qhd,khd->hqk', q3, k3,
                   preferred_element_type=jnp.float32)            # (H, tq, tk)

    # Online softmax update (no pre-softmax scaling, per the reference).
    m_prev = m_scr[...]
    m_new = jnp.maximum(m_prev, jnp.max(s, axis=-1, keepdims=True))
    alpha = jnp.exp(m_prev - m_new)
    p = jnp.exp(s - m_new)
    l_scr[...] = alpha * l_scr[...] + jnp.sum(p, axis=-1, keepdims=True)
    acc_scr[...] = alpha * acc_scr[...] + jnp.einsum(
        'hqk,khd->hqd', p.astype(v3.dtype), v3,
        preferred_element_type=jnp.float32)                       # (H, tq, D)
    m_scr[...] = m_new

    @pl.when(ki == nk - 1)
    def _finalize():
        # Post-softmax 1/sqrt(F) is folded into Wp on the host (exact: dropout=0, no mask).
        inv_l = pl.reciprocal(l_scr[...], approx=True)            # (H, tq, 1) via EUP
        ctx = acc_scr[...] * inv_l                                # (H, tq, D) f32
        ctx = jnp.transpose(ctx, (1, 0, 2)).reshape(-1, F_)       # (tq, F), lane-dense
        out = jnp.dot(ctx.astype(q_scr.dtype), wp_ref[...],
                      preferred_element_type=jnp.float32) + bp_ref[...]
        o_ref[...] = out.astype(o_ref.dtype)


# --------------------------------------------------------------------------------------
# Host-side param prep (one-time, outside the hot call path).
# --------------------------------------------------------------------------------------
def prepare_params(params, feat_size):
    """Transpose weights to (in, out), stack K/V, fold post-softmax 1/sqrt(F) into Wp."""
    wq, bq, wk, bk, wv, bv, wp, bp = params
    F_ = feat_size
    wq_t = wq.T                                                    # (F, F)
    wkv_t = jnp.concatenate([wk, wv], axis=0).T                    # (F, 2F)
    bkv = jnp.concatenate([bk, bv]).reshape(1, 2 * F_)
    wp_t = (wp * (1.0 / (F_ ** 0.5))).T                            # fold post-softmax scale
    return (wq_t, bq.reshape(1, F_), wkv_t, bkv, wp_t, bp.reshape(1, F_))


def _clamp_vmem(est_bytes):
    # Override v5e's 16 MiB scoped default; stay within v7x's 64 MiB physical VMEM.
    return int(min(max(2 * est_bytes, 32 * 1024 * 1024), 64 * 1024 * 1024))


def _pick_kv_tile(nk):
    if nk <= 512:
        return nk
    for c in (512, 256, 128):
        if nk % c == 0:
            return c
    # TODO(synk): mask padded key columns to support ragged Nk with a fixed kv tile.
    return nk


def multi_head_attention(x, y, prepared_params, *, num_heads):
    """x: (B, Nq, F) queries, y: (B, Nk, F) keys/values."""
    B, Nq, F_ = x.shape
    _, Nk, _ = y.shape
    assert F_ % num_heads == 0
    D = F_ // num_heads
    wq_t, bq2, wkv_t, bkv2, wp_t, bp2 = prepared_params

    # ---- query tiling (pad ragged Nq instead of one giant tile) ----
    if Nq <= 128:
        tq, nq_pad = Nq, Nq
    else:
        tq = 128
        nq_pad = pl.cdiv(Nq, tq) * tq
    n_qblocks = nq_pad // tq
    x_in = x if nq_pad == Nq else jnp.pad(x, ((0, 0), (0, nq_pad - Nq), (0, 0)))

    # ---- kv tiling for the online softmax ----
    tk = _pick_kv_tile(Nk)
    n_kblocks = Nk // tk

    isz = jnp.dtype(x.dtype).itemsize
    lane = 128
    d_pad = max(D, lane)

    # -------------------- stage 1: K/V projection --------------------
    kv_est = (2 * isz * (3 * tk * F_)                 # y block + k/v out blocks (double-buffered)
              + 2 * isz * (2 * F_ * F_ + 2 * F_)      # wkv_t + bias (double-buffered)
              + 4 * tk * 2 * F_)                      # f32 kv intermediate
    k_all, v_all = pl.pallas_call(
        functools.partial(_kv_proj_kernel, feat_size=F_),
        out_shape=(jax.ShapeDtypeStruct((B, Nk, F_), x.dtype),
                   jax.ShapeDtypeStruct((B, Nk, F_), x.dtype)),
        grid_spec=pltpu.PrefetchScalarGridSpec(
            num_scalar_prefetch=0,
            grid=(B, n_kblocks),
            in_specs=[
                pl.BlockSpec((None, tk, F_), lambda b, ki: (b, ki, 0)),    # y
                pl.BlockSpec((F_, 2 * F_), lambda b, ki: (0, 0)),          # [Wk;Wv]^T
                pl.BlockSpec((1, 2 * F_), lambda b, ki: (0, 0)),           # [bk;bv]
            ],
            out_specs=[
                pl.BlockSpec((None, tk, F_), lambda b, ki: (b, ki, 0)),    # K
                pl.BlockSpec((None, tk, F_), lambda b, ki: (b, ki, 0)),    # V
            ],
        ),
        compiler_params=pltpu.CompilerParams(
            dimension_semantics=("parallel", "parallel"),
            vmem_limit_bytes=_clamp_vmem(kv_est),
        ),
    )(y, wkv_t, bkv2)

    # -------------------- stage 2: attention --------------------
    attn_est = (2 * isz * (2 * tq * F_ + 2 * tk * F_)              # x/out + k/v blocks (dbl-buf)
                + 2 * isz * (2 * F_ * F_ + 2 * F_)                 # wq_t, wp_t + biases
                + isz * tq * num_heads * d_pad                     # q scratch
                + 4 * num_heads * tq * (2 * lane + d_pad)          # m, l, acc scratch (f32)
                + 4 * 3 * num_heads * tq * max(tk, lane))          # live f32 s/p tiles
    kernel = functools.partial(_attn_kernel, num_heads=num_heads, head_dim=D)

    out = pl.pallas_call(
        kernel,
        out_shape=jax.ShapeDtypeStruct((B, nq_pad, F_), x.dtype),
        grid_spec=pltpu.PrefetchScalarGridSpec(
            num_scalar_prefetch=0,
            grid=(B, n_qblocks, n_kblocks),
            in_specs=[
                pl.BlockSpec((None, tq, F_), lambda b, qi, ki: (b, qi, 0)),   # x
                pl.BlockSpec((None, tk, F_), lambda b, qi, ki: (b, ki, 0)),   # K
                pl.BlockSpec((None, tk, F_), lambda b, qi, ki: (b, ki, 0)),   # V
                pl.BlockSpec((F_, F_), lambda b, qi, ki: (0, 0)),             # Wq^T
                pl.BlockSpec((1, F_), lambda b, qi, ki: (0, 0)),              # bq
                pl.BlockSpec((F_, F_), lambda b, qi, ki: (0, 0)),             # Wp^T (scale folded)
                pl.BlockSpec((1, F_), lambda b, qi, ki: (0, 0)),              # bp
            ],
            out_specs=pl.BlockSpec((None, tq, F_), lambda b, qi, ki: (b, qi, 0)),
            scratch_shapes=[
                pltpu.VMEM((tq, num_heads, D), x.dtype),       # Q (heads split, input dtype)
                pltpu.VMEM((num_heads, tq, 1), jnp.float32),   # running max
                pltpu.VMEM((num_heads, tq, 1), jnp.float32),   # running denom
                pltpu.VMEM((num_heads, tq, D), jnp.float32),   # context accumulator
            ],
        ),
        compiler_params=pltpu.CompilerParams(
            dimension_semantics=("parallel", "parallel", "arbitrary"),
            vmem_limit_bytes=_clamp_vmem(attn_est),
        ),
    )(x_in, k_all, v_all, wq_t, bq2, wp_t, bp2)

    if nq_pad != Nq:
        out = out[:, :Nq, :]
    return out


# --------------------------------------------------------------------------------------
# Pure-JAX reference mirroring the PyTorch forward (default config, original params).
# --------------------------------------------------------------------------------------
def reference(x, y, params, num_heads):
    wq, bq, wk, bk, wv, bv, wp, bp = params
    B, Nq, F_ = x.shape
    D = F_ // num_heads
    q = x @ wq.T + bq
    k = y @ wk.T + bk
    v = y @ wv.T + bv
    q = q.reshape(B, Nq, num_heads, D).transpose(0, 2, 1, 3)
    k = k.reshape(B, -1, num_heads, D).transpose(0, 2, 1, 3)
    v = v.reshape(B, -1, num_heads, D).transpose(0, 2, 1, 3)
    energy = jnp.einsum('bhqd,bhkd->bhqk', q, k)
    att = jax.nn.softmax(energy, axis=-1) / (F_ ** 0.5)
    out = jnp.einsum('bhqk,bhkd->bhqd', att, v)
    out = out.transpose(0, 2, 1, 3).reshape(B, Nq, F_)
    return out @ wp.T + bp


if __name__ == "__main__":
    # Small shapes consistent with the module: feat_size=32, num_heads=4, seq=8, batch=2.
    B, N, F, H = 2, 8, 32, 4

    key = jax.random.PRNGKey(0)
    keys = jax.random.split(key, 8)
    x = jax.random.normal(keys[0], (B, N, F), jnp.float32)
    y = jax.random.normal(keys[1], (B, N, F), jnp.float32)

    # Deterministic nn.Linear-style init: U(-1/sqrt(fan_in), 1/sqrt(fan_in)).
    bound = 1.0 / (F ** 0.5)

    def linear_params(k):
        kw, kb = jax.random.split(k)
        w = jax.random.uniform(kw, (F, F), jnp.float32, -bound, bound)
        b = jax.random.uniform(kb, (F,), jnp.float32, -bound, bound)
        return w, b

    wq, bq = linear_params(keys[2])
    wk, bk = linear_params(keys[3])
    wv, bv = linear_params(keys[4])
    wp, bp = linear_params(keys[5])
    params = (wq, bq, wk, bk, wv, bv, wp, bp)

    prepared = prepare_params(params, F)            # one-time, outside the hot path
    out = multi_head_attention(x, y, prepared, num_heads=H)
    out = jax.block_until_ready(out)

    ref = reference(x, y, params, H)
    assert out.shape == (B, N, F) and out.dtype == jnp.float32
    err = float(jnp.max(jnp.abs(out - ref)))
    # Slightly looser than 1e-4: approx reciprocal in the softmax normalization.
    assert jnp.allclose(out, ref, atol=2e-3, rtol=2e-3), err

    print("KERNEL_OK")
</pallas_src>

<mosaic_0001>
module attributes {stable_mosaic.version = 11 : i64} {
  func.func @_kv_proj_kernel(%arg0: i32, %arg1: i32, %arg2: memref<1x8x32xf32, #tpu.memory_space<vmem>>, %arg3: memref<32x64xf32, #tpu.memory_space<vmem>>, %arg4: memref<1x64xf32, #tpu.memory_space<vmem>>, %arg5: memref<1x8x32xf32, #tpu.memory_space<vmem>>, %arg6: memref<1x8x32xf32, #tpu.memory_space<vmem>>) attributes {dimension_semantics = [#tpu.dimension_semantics<parallel>, #tpu.dimension_semantics<parallel>], iteration_bounds = array<i64: 2, 1>, scalar_prefetch = 0 : i64, scratch_operands = 0 : i64, tpu.core_type = #tpu.core_type<tc>, window_params = [{transform_indices = @transform_0, window_bounds = array<i64: 1, 8, 32>}, {pipeline_mode = #tpu.pipeline_mode<synchronous>, transform_indices = @transform_1, window_bounds = array<i64: 32, 64>}, {pipeline_mode = #tpu.pipeline_mode<synchronous>, transform_indices = @transform_2, window_bounds = array<i64: 1, 64>}, {transform_indices = @transform_3, window_bounds = array<i64: 1, 8, 32>}, {transform_indices = @transform_4, window_bounds = array<i64: 1, 8, 32>}]} {
    %c0 = arith.constant 0 : index
    %c0_0 = arith.constant 0 : index
    %c0_1 = arith.constant 0 : index
    %0 = vector.load %arg2[%c0, %c0_0, %c0_1] : memref<1x8x32xf32, #tpu.memory_space<vmem>>, vector<1x8x32xf32>
    %1 = vector.shape_cast %0 : vector<1x8x32xf32> to vector<8x32xf32>
    %c0_2 = arith.constant 0 : index
    %c0_3 = arith.constant 0 : index
    %2 = vector.load %arg3[%c0_2, %c0_3] : memref<32x64xf32, #tpu.memory_space<vmem>>, vector<32x64xf32>
    %cst = arith.constant dense<0.000000e+00> : vector<8x64xf32>
    %3 = tpu.matmul %1, %2, %cst {dimension_numbers = #tpu.dot_dimension_numbers<[1], [0], [0], [1], [0, 0, 1, 1], [], []>} : vector<8x32xf32>, vector<32x64xf32>, vector<8x64xf32> -> vector<8x64xf32>
    %c0_4 = arith.constant 0 : index
    %c0_5 = arith.constant 0 : index
    %4 = vector.load %arg4[%c0_4, %c0_5] : memref<1x64xf32, #tpu.memory_space<vmem>>, vector<1x64xf32>
    %5 = vector.broadcast %4 : vector<1x64xf32> to vector<8x64xf32>
    %6 = arith.addf %3, %5 : vector<8x64xf32>
    %7 = vector.extract_strided_slice %6 {offsets = [0, 0], sizes = [8, 32], strides = [1, 1]} : vector<8x64xf32> to vector<8x32xf32>
    %c0_6 = arith.constant 0 : index
    %c0_7 = arith.constant 0 : index
    %c0_8 = arith.constant 0 : index
    %8 = vector.load %arg5[%c0_6, %c0_7, %c0_8] : memref<1x8x32xf32, #tpu.memory_space<vmem>>, vector<1x8x32xf32>
    %9 = vector.shape_cast %8 : vector<1x8x32xf32> to vector<8x32xf32>
    %10 = vector.shape_cast %7 : vector<8x32xf32> to vector<1x8x32xf32>
    tpu.vector_store %arg5[%c0_6, %c0_7, %c0_8], %10 {strides = array<i32>} : memref<1x8x32xf32, #tpu.memory_space<vmem>>, vector<1x8x32xf32>,
    %11 = vector.extract_strided_slice %6 {offsets = [0, 32], sizes = [8, 32], strides = [1, 1]} : vector<8x64xf32> to vector<8x32xf32>
    %c0_9 = arith.constant 0 : index
    %c0_10 = arith.constant 0 : index
    %c0_11 = arith.constant 0 : index
    %12 = vector.load %arg6[%c0_9, %c0_10, %c0_11] : memref<1x8x32xf32, #tpu.memory_space<vmem>>, vector<1x8x32xf32>
    %13 = vector.shape_cast %12 : vector<1x8x32xf32> to vector<8x32xf32>
    %14 = vector.shape_cast %11 : vector<8x32xf32> to vector<1x8x32xf32>
    tpu.vector_store %arg6[%c0_9, %c0_10, %c0_11], %14 {strides = array<i32>} : memref<1x8x32xf32, #tpu.memory_space<vmem>>, vector<1x8x32xf32>,
    return
  }
  func.func @transform_0(%arg0: i32, %arg1: i32) -> (i32, i32, i32) {
    %c0_i32 = arith.constant 0 : i32
    %c0_i32_0 = arith.constant 0 : i32
    return %arg0, %arg1, %c0_i32 : i32, i32, i32
  }
  func.func @transform_1(%arg0: i32, %arg1: i32) -> (i32, i32) {
    %c0_i32 = arith.constant 0 : i32
    %c0_i32_0 = arith.constant 0 : i32
    %c0_i32_1 = arith.constant 0 : i32
    return %c0_i32, %c0_i32_0 : i32, i32
  }
  func.func @transform_2(%arg0: i32, %arg1: i32) -> (i32, i32) {
    %c0_i32 = arith.constant 0 : i32
    %c0_i32_0 = arith.constant 0 : i32
    %c0_i32_1 = arith.constant 0 : i32
    return %c0_i32, %c0_i32_0 : i32, i32
  }
  func.func @transform_3(%arg0: i32, %arg1: i32) -> (i32, i32, i32) {
    %c0_i32 = arith.constant 0 : i32
    %c0_i32_0 = arith.constant 0 : i32
    return %arg0, %arg1, %c0_i32 : i32, i32, i32
  }
  func.func @transform_4(%arg0: i32, %arg1: i32) -> (i32, i32, i32) {
    %c0_i32 = arith.constant 0 : i32
    %c0_i32_0 = arith.constant 0 : i32
    return %arg0, %arg1, %c0_i32 : i32, i32, i32
  }
}

</mosaic_0001>

<bundles_post_ra>
// kernel: tpu_custom_call.1
= control target key start
LH: loop header
LB: loop body
LE: loop exit
PB: predicated region body
PF: predicated region fallthrough
CT: control target
= control target key end

     0   :  { %10 = vsyncpa [#allocation3], 0  ;;  %s1104_s0 = inlined_call_operand.hbm [shape: f32[2,8,32], index: 0, kind: input, shape index: {}]   ;;  %s1105_s1 = inlined_call_operand.hbm [shape: f32[32,64], index: 1, kind: input, shape index: {}]   ;;  %s1106_s2 = inlined_call_operand.vmem [shape: f32[1,64], index: 2, kind: input, shape index: {}]   ;;  %s1107_s3 = inlined_call_operand.hbm [shape: f32[2,8,32], index: 3, kind: output, shape index: {0}]   ;;  %s1108_s4 = inlined_call_operand.hbm [shape: f32[2,8,32], index: 4, kind: output, shape index: {1}]  }
   0x1   :  { %12 = vsyncpa [#allocation3 + $0x1], 0 }
   0x2   :  { %13 = vsyncpa [#allocation6], 0 }
   0x3   :  { %14 = vsyncpa [#allocation4], 0 }
   0x4   :  { %16 = vsyncpa [#allocation4 + $0x1], 0 }
   0x5   :  { %17 = vsyncpa [#allocation9], 0 }
   0x6   :  { %19 = vsyncpa [#allocation9 + $0x1], 0  ;;  %s846_s15 = smov 0   ;;  %s848_s16 = smov 0  }
   0x7   :  { %s850_s17 = smov 0   ;;  %s852_s18 = smov 0  }
   0x8   :  { %s854_s19 = smov 0   ;;  %s856_s20 = smov 0  }
   0x9 LB: > { %s507_s21 = sadd.s32 4294967295, %s809_s20   ;;  %s508_s22 = sadd.s32 4294967294, %s809_s20   ;;  %s809_s20 = sphi %s856_s20, %s25_s20   ;;  %s805_s19 = sphi %s854_s19, %s1132_s19   ;;  %s801_s18 = sphi %s852_s18, %s1131_s18   ;;  %s797_s17 = sphi %s850_s17, %s1130_s17   ;;  %s793_s16 = sphi %s848_s16, %s1129_s16   ;;  %s789_s15 = sphi %s846_s15, %s1128_s15  }
   0xa   : > { %p59_p0 = scmp.ne.s32.totalorder %s793_s16, %s789_s15  ;;  %p880_p1 = scmp.eq.s32.totalorder %s507_s21, 0 }
   0xb   : > { %p884_p2 = scmp.eq.s32.totalorder %s507_s21, 1  ;;  %p133_p3 = scmp.eq.s32.totalorder %s508_s22, 1 }
   0xc   : > { %s1113_s23 = scalar_select %p880_p1, 1, 0 }
   0xd   : > { %s1114_s24 = scalar_select %p884_p2, 1, 0 }
   0xe   : > { %p890_p4 = por %p880_p1, %p59_p0  ;;  %p509_p5 = scmp.ge.s32.totalorder %s809_s20, 1 }
   0xf   : > { %p895_p6 = por %p133_p3, %p59_p0  ;;  %p168_p7 = scmp.lt.s32.totalorder %s809_s20, 3 }
  0x10   : > { %s1115_s25 = scalar_select %p890_p4, 1, 0 }
  0x11   : > { %s1116_s26 = scalar_select %p895_p6, 1, 0 }
  0x12   : > { %p900_p8 = pnand %p509_p5, %p168_p7  ;;  %s811_s28 = smov [#allocation5]  }
  0x13   : > { %s180_s29 = sshll.u32 %s811_s28, 4  ;;  %s37_s5 = sadd.s32 1, %s805_s19  ;;  %s181_s29 = int_to_ptr.vmem [resolvable:$true] %s180_s29 }
  0x14   : > { %s1117_s27 = scalar_select %p900_p8, 1, 0 }
  0x15   : > { %p559_p9 = pneg %p900_p8  ;;  %s633_s8 = scalar_lea.hbm %s1105_s1, 512 }
  0x16   : > { %p634_p12 = scmp.ne.s32.totalorder %s1105_s1, %s633_s8  ;;  %p640_p5 = scmp.lt.u32.totalorder %s633_s8, %s1105_s1 }
  0x17   : > { %p909_p11 = pnand %p559_p9, %p880_p1 }
  0x19   : > { %p635_p13 = pneg %p909_p11 }
  0x1b   : > { %p636_p0 = pnand %p635_p13, %p634_p12 }
  0x1d   : > { %p637_p3 = pneg %p636_p0 }
  0x1f   : > { %p642_p7 = pnand %p640_p5, %p637_p3 }
  0x21   : > { %645 = shalt.err (!%p642_p7)
}
  0x22   : > { %s646_s13 = scalar_lea.vmem %s181_s29, 512  ;;  %p654_p1 = scmp.lt.s32.totalorder %s181_s29, %s181_s29 }
  0x23   : > { %p647_p9 = scmp.ne.s32.totalorder %s181_s29, %s646_s13  ;;  %p655_p4 = scmp.lt.s32.totalorder %s646_s13, %s646_s13 }
  0x25   : > { %p649_p10 = pnand %p647_p9, %p635_p13  ;;  %p656_p8 = por %p655_p4, %p654_p1 }
  0x27   : > { %p650_p6 = pneg %p649_p10 }
  0x29   : > { %p657_p2 = pnand %p656_p8, %p650_p6 }
  0x2b   : > { %660 = shalt.err (!%p657_p2)
}
  0x2c   : > { %s812_s14 = smov 128   ;;  %s813_s21 = smov 8  }
  0x2d   : > { %562 = dma.hbm_to_vmem [thread:$0]  (!%p909_p11), %s1105_s1, 512, %s181_s29, [#allocation6], %s812_s14, %s812_s14, %s813_s21  }
  0x2e   : > { %p39_p1 = scmp.ge.s32.totalorder %s37_s5, 2  ;;  %s46_s6 = sadd.s32 1, %s797_s17 }
  0x2f   : > { %p53_p2 = scmp.ne.s32.totalorder %s797_s17, %s793_s16  ;;  %p54_p4 = scmp.eq.s32.totalorder %s809_s20, 0 }
  0x30   : > { %s1134_s5 = smov (%p39_p1, %s37_s5), 0  ;;  %p1120_p8 = scmp.ne.s32.totalorder %s1114_s24, 0 }
  0x31   : > { %p936_p6 = por %p54_p4, %p53_p2  ;;  %s41_s30 = ssub.s32 %s805_s19, %s1134_s5 }
  0x32   : > { %p942_p10 = por %p1120_p8, %p53_p2  ;;  %p575_p12 = scmp.lt.s32.totalorder %s809_s20, 2 }
  0x33   : > { %p44_p11 = scmp.eq.s32.totalorder %s41_s30, 0  ;;  %s197_s29 = sand.u32 1, %s797_s17  }
  0x34   : > { %s512_s9 = sshll.u32 %s197_s29, 3  ;;  %s513_s11 = sshll.u32 %s805_s19, 7 }
  0x35   : > { %s951_s10 = scalar_select %p44_p11, %s797_s17, %s46_s6  }
  0x36   : > { %s957_s14 = scalar_lea.hbm %s1104_s0, %s513_s11  ;;  %s201_s24 = scalar_lea.vmem [#allocation2], %s512_s9 }
  0x37   : > { %s209_s21 = sshll.u32 %s201_s24, 4  ;;  %p963_p13 = pnand %p575_p12, %p936_p6  ;;  %s959_s21 = int_to_ptr.vmem [resolvable:$true] %s209_s21 }
  0x38   : > { %s198_s28 = scalar_lea.sflag [#allocation3], %s197_s29  ;;  %s661_s6 = scalar_lea.hbm %s957_s14, 128 }
  0x39   : > { %p662_p0 = scmp.ne.s32.totalorder %s957_s14, %s661_s6  ;;  %p663_p3 = pneg %p963_p13 }
  0x3a   : > { %s666_s11 = scalar_lea.hbm %s1104_s0, 256  ;;  %p667_p9 = scmp.lt.u32.totalorder %s957_s14, %s1104_s0 }
  0x3b   : > { %p664_p5 = pnand %p663_p3, %p662_p0  ;;  %p668_p1 = scmp.lt.u32.totalorder %s666_s11, %s661_s6 }
  0x3c   : > { %p670_p4 = scmp.lt.u32.totalorder %s661_s6, %s957_s14 }
  0x3d   : > { %p665_p7 = pneg %p664_p5  ;;  %p669_p2 = por %p668_p1, %p667_p9 }
  0x3f   : > { %p671_p6 = por %p670_p4, %p669_p2 }
  0x41   : > { %p672_p8 = pnand %p671_p6, %p665_p7 }
  0x43   : > { %675 = shalt.err (!%p672_p8)
}
  0x44   : > { %s676_s29 = scalar_lea.vmem %s959_s21, 128  ;;  %s814_s13 = smov [#allocation2]  }
  0x45   : > { %p677_p12 = scmp.ne.s32.totalorder %s959_s21, %s676_s29  ;;  %s681_s24 = sshll.u32 %s814_s13, 4  ;;  %s682_s24 = int_to_ptr.vmem [resolvable:$false] %s681_s24 }
  0x46   : > { %s683_s30 = scalar_lea.vmem %s682_s24, 256  ;;  %p684_p5 = scmp.lt.s32.totalorder %s959_s21, %s682_s24 }
  0x47   : > { %p679_p11 = pnand %p677_p12, %p663_p3  ;;  %p685_p9 = scmp.lt.s32.totalorder %s683_s30, %s676_s29 }
  0x49   : > { %p680_p0 = pneg %p679_p11  ;;  %p686_p1 = por %p685_p9, %p684_p5 }
  0x4b   : > { %p687_p2 = pnand %p686_p1, %p680_p0 }
  0x4d   : > { %690 = shalt.err (!%p687_p2)
}
  0x4e   : > { %566 = dma.hbm_to_vmem [thread:$0]  (!%p963_p13), %s957_s14, 128, %s959_s21, %s198_s28  }
  0x4f   : > { %p1123_p7 = scmp.ne.s32.totalorder %s1117_s27, 0 }
  0x50   : > { %s995_s6 = sand.u32 (!%p1123_p7), 1, %s793_s16   ;;  %p1124_p3 = scmp.ne.s32.totalorder (!%p1123_p7), %s1115_s25, 0 }
  0x51   : > { %218 = sbr.rel (%p1123_p7) target bundleno = 446 (0x1be), region = 32  ;;  %s998_s9 = sshll.u32 (!%p1123_p7), %s995_s6, 3 }
  0x52   : > { %s221_s11 = scalar_lea.sflag (!%p1123_p7), [#allocation3], %s995_s6  ;;  %s224_s7 = scalar_lea.vmem (!%p1123_p7), [#allocation2], %s998_s9 }
  0x58   : > { %772 = dma.done.wait (%p1124_p3), %s221_s11, 128  }
  0x59   : > { %774 = vsyncadd (%p1124_p3), %s221_s11, 4294967168  ;;  %p1125_p13 = scmp.ne.s32.totalorder %s1113_s23, 0 }
  0x5b   : > { %776 = dma.done.wait (%p1125_p13), [#allocation6], 512  }
  0x5c   : > { %778 = vsyncadd (%p1125_p13), [#allocation6], 4294966784  ;;  %v815_v0 = vmov 0.0|0.0   ;;  %vm816_vm0 = vmmov 0   ;;  %v817_v1 = vmov 0.0   ;;  %v259_v2 = vld [vmem:[#allocation5] sm:$0xff] }
  0x5d   : > { %543 = vmatprep.subr.bf16.mxu0 %v815_v0  ;;  %540 = vmatprep.mubr.msk.f32.mxu0 %vm816_vm0, %v817_v1  ;;  %v260_v3 = vld [vmem:[#allocation5 + $0x8] sm:$0xff]  ;;  %v261_v4 = vld [vmem:[#allocation5 + $0x10] sm:$0xff]  ;;  %v262_v6 = vld [vmem:[#allocation5 + $0x18] sm:$0xff]  ;;  %vm270_vm1 = vcmask 261120   ;;  %s523_s27 = sshll.u32 %s801_s18, 7  ;;  %s250_s14 = scalar_lea.vmem [#allocation7], %s998_s9 }
  0x5e   : > { %v544_v5 = vpack.c.bf16 %v260_v3, %v259_v2  ;;  %v547_v7 = vpack.c.bf16 %v262_v6, %v261_v4  ;;  %v258_v8 = vld [vmem:[%s224_s7] sm:$0xff]  ;;  %s370_s21 = sshll.u32 %s250_s14, 4  ;;  %s1021_s12 = scalar_lea.hbm %s1107_s3, %s523_s27  ;;  %s1023_s21 = int_to_ptr.vmem [resolvable:$true] %s370_s21 }
  0x5f   : > { %v519_v9 = vld [vmem:[%s1106_s2] ss:$0 sm:$0xff]  ;;  %s818_s29 = smov 96   ;;  %s351_s13 = scalar_lea.sflag [#allocation4], %s995_s6 }
  0x60   : > { %545 = vmatpush3.bf16.msra.mxu0 %v544_v5  ;;  %s691_s24 = scalar_lea.vmem %s1023_s21, 128  ;;  %s819_s30 = smov [#allocation7]  }
  0x61   : > { %546 = vmatprep.subr.bf16.mxu0 %v815_v0  ;;  %p692_p4 = scmp.ne.s32.totalorder %s1023_s21, %s691_s24  ;;  %s695_s11 = sshll.u32 %s819_s30, 4  ;;  %s696_s11 = int_to_ptr.vmem [resolvable:$false] %s695_s11 }
  0x62   : > { %s697_s7 = scalar_lea.vmem %s696_s11, 256  ;;  %p698_p12 = scmp.lt.s32.totalorder %s1023_s21, %s696_s11 }
  0x63   : > { %p693_p6 = pnand %p692_p4, %p942_p10  ;;  %p699_p11 = scmp.lt.s32.totalorder %s697_s7, %s691_s24 }
  0x64   : > { %548 = vmatpush3.bf16.msra.mxu0 %v547_v7 }
  0x65   : > { %p694_p8 = pneg %p693_p6  ;;  %p700_p0 = por %p699_p11, %p698_p12 }
  0x67   : > { %541 = vmatmul.mubr.msk.f32.vlgmr.msra.gmra.mrb[0].mxu0 %vm270_vm1, %v258_v8  ;;  %p701_p5 = pnand %p700_p0, %p694_p8 }
 0x13a   : > { %v340_v10 = vpop.f32.mrb[0].mxu0 }
 0x13b   : > { %v341_v11 = vadd.f32 %v519_v9, %v340_v10  ;;  %v542_v12 = vpop.f32.mrb[1].mxu0 }
 0x13d   : > { %346 = vrot.lane.b32.xlu0 %v341_v11, %s818_s29  ;;  %344 = vst.msk [vmem:[%s250_s14] sm:$0xff] %vm270_vm1, %v341_v11 }
 0x13e   : > { %704 = shalt.err (!%p701_p5)
}
 0x13f   : > { %s705_s23 = scalar_lea.hbm %s1021_s12, 128  ;;  %s709_s22 = scalar_lea.hbm %s1107_s3, 256 }
 0x140   : > { %p706_p9 = scmp.ne.s32.totalorder %s1021_s12, %s705_s23  ;;  %p710_p7 = scmp.lt.u32.totalorder %s1021_s12, %s1107_s3 }
 0x141   : > { %p711_p3 = scmp.lt.u32.totalorder %s709_s22, %s705_s23  ;;  %p713_p4 = scmp.lt.u32.totalorder %s705_s23, %s1021_s12 }
 0x142   : > { %p707_p1 = pnand %p706_p9, %p942_p10 }
 0x143   : > { %p712_p13 = por %p711_p3, %p710_p7 }
 0x144   : > { %p708_p2 = pneg %p707_p1 }
 0x145   : > { %p714_p6 = por %p713_p4, %p712_p13 }
 0x147   : > { %p715_p8 = pnand %p714_p6, %p708_p2 }
 0x149   : > { %718 = shalt.err (!%p715_p8)
}
 0x14a   : > { %555 = dma.vmem_to_hbm [thread:$0]  (%p942_p10), %s1023_s21, 128, %s1021_s12, %s351_s13  }
 0x14b   : > { %s257_s24 = scalar_lea.vmem [#allocation8], %s998_s9  ;;  %s1054_s25 = scalar_lea.hbm %s1108_s4, %s523_s27 }
 0x14c   : > { %s384_s30 = sshll.u32 %s257_s24, 4  ;;  %s356_s23 = scalar_lea.sflag [#allocation9], %s995_s6  ;;  %s1056_s30 = int_to_ptr.vmem [resolvable:$true] %s384_s30 }
 0x14d   : > { %s719_s14 = scalar_lea.vmem %s1056_s30, 128  ;;  %s820_s18 = smov [#allocation8]  }
 0x14e   : > { %p720_p12 = scmp.ne.s32.totalorder %s1056_s30, %s719_s14  ;;  %s723_s9 = sshll.u32 %s820_s18, 4  ;;  %s724_s9 = int_to_ptr.vmem [resolvable:$false] %s723_s9 }
 0x14f   : > { %s725_s21 = scalar_lea.vmem %s724_s9, 256  ;;  %p726_p5 = scmp.lt.s32.totalorder %s1056_s30, %s724_s9 }
 0x150   : > { %p721_p11 = pnand %p720_p12, %p942_p10  ;;  %p727_p9 = scmp.lt.s32.totalorder %s725_s21, %s719_s14 }
 0x152   : > { %p722_p0 = pneg %p721_p11  ;;  %p728_p1 = por %p727_p9, %p726_p5 }
 0x154   : > { %p729_p2 = pnand %p728_p1, %p722_p0 }
 0x1af   : > { %v347_v13 = vpop.permute.xlu0 %346 }
 0x1b0   : > { %349 = vst.msk [vmem:[%s257_s24] sm:$0xff] %vm270_vm1, %v347_v13 }
 0x1b1   : > { %732 = shalt.err (!%p729_p2)
}
 0x1b2   : > { %s733_s6 = scalar_lea.hbm %s1054_s25, 128  ;;  %s737_s13 = scalar_lea.hbm %s1108_s4, 256 }
 0x1b3   : > { %p734_p7 = scmp.ne.s32.totalorder %s1054_s25, %s733_s6  ;;  %p738_p4 = scmp.lt.u32.totalorder %s1054_s25, %s1108_s4 }
 0x1b4   : > { %p739_p6 = scmp.lt.u32.totalorder %s737_s13, %s733_s6  ;;  %p741_p12 = scmp.lt.u32.totalorder %s733_s6, %s1054_s25 }
 0x1b5   : > { %p735_p3 = pnand %p734_p7, %p942_p10 }
 0x1b6   : > { %p740_p8 = por %p739_p6, %p738_p4 }
 0x1b7   : > { %p736_p13 = pneg %p735_p3 }
 0x1b8   : > { %p742_p11 = por %p741_p12, %p740_p8 }
 0x1ba   : > { %p743_p0 = pnand %p742_p11, %p736_p13 }
 0x1bc   : > { %746 = shalt.err (!%p743_p0)
}
 0x1bd   : > { %556 = dma.vmem_to_hbm [thread:$0]  (%p942_p10), %s1056_s30, 128, %s1054_s25, %s356_s23  }
 0x1be PF: > { %s396_s29 = sand.u32 1, %s789_s15   ;;  %p1126_p5 = scmp.ne.s32.totalorder %s1116_s26, 0 }
 0x1bf   : > { %p1127_p9 = scmp.ge.s32.totalorder %s809_s20, 2  ;;  %s397_s24 = scalar_lea.sflag [#allocation4], %s396_s29 }
 0x1c1   : > { %p568_p1 = pnand %p1127_p9, %p1126_p5 }
 0x1c3   : > { %780 = dma.done.wait (!%p568_p1), %s397_s24, 128  }
 0x1c4   : > { %782 = vsyncadd (!%p568_p1), %s397_s24, 4294967168  ;;  %s406_s11 = scalar_lea.sflag [#allocation9], %s396_s29 }
 0x1c5   : > { %784 = dma.done.wait (!%p568_p1), %s406_s11, 128  }
 0x1c6   : > { %786 = vsyncadd (!%p568_p1), %s406_s11, 4294967168  ;;  %s25_s20 = sadd.s32 1, %s809_s20   ;;  %s1128_s15 = smov %s793_s16 }
 0x1c7   : > { %p22_p2 = scmp.ge.s32.totalorder %s25_s20, 4   ;;  %s1129_s16 = smov %s797_s17 }
 0x1c8   : > { %s1130_s17 = smov %s951_s10  ;;  %s1131_s18 = smov %s805_s19 }
 0x1c9   : > { %s1132_s19 = smov %s1134_s5  ;;  %24 = sbr.rel (!%p22_p2) target bundleno = 9 (0x9), region = 98 }
 0x1d0   :  { %411 = vsyncpa [#allocation3], 1 }
 0x1d1   :  { %413 = vsyncpa [#allocation3 + $0x1], 1 }
 0x1d2   :  { %414 = vsyncpa [#allocation6], 1 }
 0x1d3   :  { %415 = vsyncpa [#allocation4], 1 }
 0x1d4   :  { %417 = vsyncpa [#allocation4 + $0x1], 1 }
 0x1d5   :  { %418 = vsyncpa [#allocation9], 1 }
 0x1d6   :  { %420 = vsyncpa [#allocation9 + $0x1], 1 }

</bundles_post_ra>
